<compile_context>
chip_gen: v6e
topology: v6e:2x2x1
jax: 0.10.0
libtpu: 0.0.40
codegen_flags: <defaults>
</compile_context>

<pallas_src>
import jax
import jax.numpy as jnp
from jax.experimental import pallas as pl
from jax.experimental.pallas import tpu as pltpu


D_IN, H1, H2, D_OUT = 63, 128, 64, 5
D_IN_PAD, D_OUT_PAD = 64, 128          # K alignment / lane-dense output


def handmodel_kernel(x_ref, w1_ref, b1_ref, w2_ref, b2_ref, w3_ref, b3_ref,
                     o_ref):
    # fc1 + relu  (bf16 MXU inputs, f32 accumulation, f32 elementwise)
    x = x_ref[...]                                               # (TM, 64) bf16
    h1 = jnp.dot(x, w1_ref[...], preferred_element_type=jnp.float32)
    h1 = jnp.maximum(h1 + b1_ref[...], 0.0)                      # (TM, 128) f32

    # fc2 + relu
    h2 = jnp.dot(h1.astype(jnp.bfloat16), w2_ref[...],
                 preferred_element_type=jnp.float32)
    h2 = jnp.maximum(h2 + b2_ref[...], 0.0)                      # (TM, 64) f32

    # fc3 (output padded to 128 lanes -> unmasked vst, no masked MXU pops)
    logits = jnp.dot(h2.astype(jnp.bfloat16), w3_ref[...],
                     preferred_element_type=jnp.float32)
    o_ref[...] = logits + b3_ref[...]                            # (TM, 128) f32


def _round_up(n, m):
    return ((n + m - 1) // m) * m


def _prep_params(params):
    """Cast matmul operands to bf16 and pad to lane-friendly shapes."""
    w1, b1, w2, b2, w3, b3 = params
    w1p = jnp.pad(w1, ((0, D_IN_PAD - D_IN), (0, 0))).astype(jnp.bfloat16)
    w2p = w2.astype(jnp.bfloat16)
    w3p = jnp.pad(w3, ((0, 0), (0, D_OUT_PAD - D_OUT))).astype(jnp.bfloat16)
    b3p = jnp.pad(b3, ((0, 0), (0, D_OUT_PAD - D_OUT)))          # f32
    return w1p, b1, w2p, b2, w3p, b3p


def handmodel_forward(x, params, *, tm=512):
    """x: (B, 63) float32. Returns (B, 5) float32 softmaxed over dim 0."""
    B = x.shape[0]
    TM = min(tm, _round_up(B, 8))            # batch tile (multiple of 8)
    B_pad = _round_up(B, TM)
    n_tiles = B_pad // TM

    # Pad rows to a multiple of TM, pad K from 63 -> 64, halve HBM traffic
    # with bf16 activations.
    xp = jnp.pad(x, ((0, B_pad - B), (0, D_IN_PAD - D_IN))).astype(jnp.bfloat16)
    w1p, b1, w2p, b2, w3p, b3p = _prep_params(params)

    def resident(a):
        return pl.BlockSpec(a.shape, lambda i: (0, 0))

    logits_pad = pl.pallas_call(
        handmodel_kernel,
        out_shape=jax.ShapeDtypeStruct((B_pad, D_OUT_PAD), jnp.float32),
        grid=(n_tiles,),
        in_specs=[pl.BlockSpec((TM, D_IN_PAD), lambda i: (i, 0)),
                  resident(w1p), resident(b1), resident(w2p), resident(b2),
                  resident(w3p), resident(b3p)],
        out_specs=pl.BlockSpec((TM, D_OUT_PAD), lambda i: (i, 0)),
        compiler_params=pltpu.CompilerParams(
            dimension_semantics=("parallel",)),
    )(xp, w1p, b1, w2p, b2, w3p, b3p)

    # softmax over dim=0 (batch) is a global reduction across batch tiles, so
    # it is applied here on the tiny (B, 5) logits; the kernel grid stays
    # fully parallel.
    logits = logits_pad[:B, :D_OUT]
    return jax.nn.softmax(logits, axis=0)


def init_params(key):
    """Deterministic init matching nn.Linear shapes (stored transposed as
    (in, out)); uniform(-1/sqrt(fan_in), 1/sqrt(fan_in)) like PyTorch."""
    dims = [(D_IN, H1), (H1, H2), (H2, D_OUT)]
    params = []
    for (fan_in, fan_out) in dims:
        key, kw, kb = jax.random.split(key, 3)
        bound = 1.0 / (fan_in ** 0.5)
        w = jax.random.uniform(kw, (fan_in, fan_out), jnp.float32,
                               minval=-bound, maxval=bound)
        b = jax.random.uniform(kb, (1, fan_out), jnp.float32,
                               minval=-bound, maxval=bound)
        params += [w, b]
    return tuple(params)


def reference_forward(x, params):
    w1, b1, w2, b2, w3, b3 = params
    h1 = jnp.maximum(x @ w1 + b1, 0.0)
    h2 = jnp.maximum(h1 @ w2 + b2, 0.0)
    logits = h2 @ w3 + b3
    return jax.nn.softmax(logits, axis=0)


if __name__ == "__main__":
    key = jax.random.PRNGKey(0)
    kx, kp, kx2 = jax.random.split(key, 3)

    params = init_params(kp)

    # Small demo batch (single tile).
    B = 8
    x = jax.random.normal(kx, (B, D_IN), dtype=jnp.float32)
    out = jax.block_until_ready(handmodel_forward(x, params))
    ref = reference_forward(x, params)
    assert out.shape == (B, D_OUT)
    assert jnp.allclose(out, ref, atol=5e-3, rtol=2e-2), (
        f"max abs err {jnp.max(jnp.abs(out - ref))}")

    # Multi-tile batch (exercises the grid, row padding, resident weights).
    B2 = 1000
    x2 = jax.random.normal(kx2, (B2, D_IN), dtype=jnp.float32)
    out2 = jax.block_until_ready(handmodel_forward(x2, params))
    ref2 = reference_forward(x2, params)
    assert out2.shape == (B2, D_OUT)
    assert jnp.allclose(out2, ref2, atol=5e-3, rtol=2e-2), (
        f"max abs err {jnp.max(jnp.abs(out2 - ref2))}")

    print("KERNEL_OK")
</pallas_src>

<mosaic_0001>
module attributes {stable_mosaic.version = 11 : i64} {
  func.func @handmodel_kernel(%arg0: i32, %arg1: memref<8x64xbf16, #tpu.memory_space<vmem>>, %arg2: memref<64x128xbf16, #tpu.memory_space<vmem>>, %arg3: memref<1x128xf32, #tpu.memory_space<vmem>>, %arg4: memref<128x64xbf16, #tpu.memory_space<vmem>>, %arg5: memref<1x64xf32, #tpu.memory_space<vmem>>, %arg6: memref<64x128xbf16, #tpu.memory_space<vmem>>, %arg7: memref<1x128xf32, #tpu.memory_space<vmem>>, %arg8: memref<8x128xf32, #tpu.memory_space<vmem>>) attributes {dimension_semantics = [#tpu.dimension_semantics<parallel>], iteration_bounds = array<i64: 1>, scalar_prefetch = 0 : i64, scratch_operands = 0 : i64, tpu.core_type = #tpu.core_type<tc>, window_params = [{transform_indices = @transform_0, window_bounds = array<i64: 8, 64>}, {pipeline_mode = #tpu.pipeline_mode<synchronous>, transform_indices = @transform_1, window_bounds = array<i64: 64, 128>}, {pipeline_mode = #tpu.pipeline_mode<synchronous>, transform_indices = @transform_2, window_bounds = array<i64: 1, 128>}, {pipeline_mode = #tpu.pipeline_mode<synchronous>, transform_indices = @transform_3, window_bounds = array<i64: 128, 64>}, {pipeline_mode = #tpu.pipeline_mode<synchronous>, transform_indices = @transform_4, window_bounds = array<i64: 1, 64>}, {pipeline_mode = #tpu.pipeline_mode<synchronous>, transform_indices = @transform_5, window_bounds = array<i64: 64, 128>}, {pipeline_mode = #tpu.pipeline_mode<synchronous>, transform_indices = @transform_6, window_bounds = array<i64: 1, 128>}, {transform_indices = @transform_7, window_bounds = array<i64: 8, 128>}]} {
    %c0 = arith.constant 0 : index
    %c0_0 = arith.constant 0 : index
    %0 = vector.load %arg1[%c0, %c0_0] : memref<8x64xbf16, #tpu.memory_space<vmem>>, vector<8x64xbf16>
    %c0_1 = arith.constant 0 : index
    %c0_2 = arith.constant 0 : index
    %1 = vector.load %arg2[%c0_1, %c0_2] : memref<64x128xbf16, #tpu.memory_space<vmem>>, vector<64x128xbf16>
    %cst = arith.constant dense<0.000000e+00> : vector<8x128xf32>
    %2 = tpu.matmul %0, %1, %cst {dimension_numbers = #tpu.dot_dimension_numbers<[1], [0], [0], [1], [0, 0, 1, 1], [], []>} : vector<8x64xbf16>, vector<64x128xbf16>, vector<8x128xf32> -> vector<8x128xf32>
    %c0_3 = arith.constant 0 : index
    %c0_4 = arith.constant 0 : index
    %3 = vector.load %arg3[%c0_3, %c0_4] : memref<1x128xf32, #tpu.memory_space<vmem>>, vector<1x128xf32>
    %4 = vector.broadcast %3 : vector<1x128xf32> to vector<8x128xf32>
    %5 = arith.addf %2, %4 : vector<8x128xf32>
    %cst_5 = arith.constant 0.000000e+00 : f32
    %6 = vector.broadcast %cst_5 : f32 to vector<8x128xf32>
    %7 = arith.maximumf %5, %6 : vector<8x128xf32>
    %8 = arith.truncf %7 : vector<8x128xf32> to vector<8x128xbf16>
    %c0_6 = arith.constant 0 : index
    %c0_7 = arith.constant 0 : index
    %9 = vector.load %arg4[%c0_6, %c0_7] : memref<128x64xbf16, #tpu.memory_space<vmem>>, vector<128x64xbf16>
    %cst_8 = arith.constant dense<0.000000e+00> : vector<8x64xf32>
    %10 = tpu.matmul %8, %9, %cst_8 {dimension_numbers = #tpu.dot_dimension_numbers<[1], [0], [0], [1], [0, 0, 1, 1], [], []>} : vector<8x128xbf16>, vector<128x64xbf16>, vector<8x64xf32> -> vector<8x64xf32>
    %c0_9 = arith.constant 0 : index
    %c0_10 = arith.constant 0 : index
    %11 = vector.load %arg5[%c0_9, %c0_10] : memref<1x64xf32, #tpu.memory_space<vmem>>, vector<1x64xf32>
    %12 = vector.broadcast %11 : vector<1x64xf32> to vector<8x64xf32>
    %13 = arith.addf %10, %12 : vector<8x64xf32>
    %cst_11 = arith.constant 0.000000e+00 : f32
    %14 = vector.broadcast %cst_11 : f32 to vector<8x64xf32>
    %15 = arith.maximumf %13, %14 : vector<8x64xf32>
    %16 = arith.truncf %15 : vector<8x64xf32> to vector<8x64xbf16>
    %c0_12 = arith.constant 0 : index
    %c0_13 = arith.constant 0 : index
    %17 = vector.load %arg6[%c0_12, %c0_13] : memref<64x128xbf16, #tpu.memory_space<vmem>>, vector<64x128xbf16>
    %cst_14 = arith.constant dense<0.000000e+00> : vector<8x128xf32>
    %18 = tpu.matmul %16, %17, %cst_14 {dimension_numbers = #tpu.dot_dimension_numbers<[1], [0], [0], [1], [0, 0, 1, 1], [], []>} : vector<8x64xbf16>, vector<64x128xbf16>, vector<8x128xf32> -> vector<8x128xf32>
    %c0_15 = arith.constant 0 : index
    %c0_16 = arith.constant 0 : index
    %19 = vector.load %arg7[%c0_15, %c0_16] : memref<1x128xf32, #tpu.memory_space<vmem>>, vector<1x128xf32>
    %20 = vector.broadcast %19 : vector<1x128xf32> to vector<8x128xf32>
    %21 = arith.addf %18, %20 : vector<8x128xf32>
    %c0_17 = arith.constant 0 : index
    %c0_18 = arith.constant 0 : index
    %22 = vector.load %arg8[%c0_17, %c0_18] : memref<8x128xf32, #tpu.memory_space<vmem>>, vector<8x128xf32>
    tpu.vector_store %arg8[%c0_17, %c0_18], %21 {strides = array<i32>} : memref<8x128xf32, #tpu.memory_space<vmem>>, vector<8x128xf32>,
    return
  }
  func.func @transform_0(%arg0: i32) -> (i32, i32) {
    %c0_i32 = arith.constant 0 : i32
    %c0_i32_0 = arith.constant 0 : i32
    return %arg0, %c0_i32 : i32, i32
  }
  func.func @transform_1(%arg0: i32) -> (i32, i32) {
    %c0_i32 = arith.constant 0 : i32
    %c0_i32_0 = arith.constant 0 : i32
    %c0_i32_1 = arith.constant 0 : i32
    return %c0_i32, %c0_i32_0 : i32, i32
  }
  func.func @transform_2(%arg0: i32) -> (i32, i32) {
    %c0_i32 = arith.constant 0 : i32
    %c0_i32_0 = arith.constant 0 : i32
    %c0_i32_1 = arith.constant 0 : i32
    return %c0_i32, %c0_i32_0 : i32, i32
  }
  func.func @transform_3(%arg0: i32) -> (i32, i32) {
    %c0_i32 = arith.constant 0 : i32
    %c0_i32_0 = arith.constant 0 : i32
    %c0_i32_1 = arith.constant 0 : i32
    return %c0_i32, %c0_i32_0 : i32, i32
  }
  func.func @transform_4(%arg0: i32) -> (i32, i32) {
    %c0_i32 = arith.constant 0 : i32
    %c0_i32_0 = arith.constant 0 : i32
    %c0_i32_1 = arith.constant 0 : i32
    return %c0_i32, %c0_i32_0 : i32, i32
  }
  func.func @transform_5(%arg0: i32) -> (i32, i32) {
    %c0_i32 = arith.constant 0 : i32
    %c0_i32_0 = arith.constant 0 : i32
    %c0_i32_1 = arith.constant 0 : i32
    return %c0_i32, %c0_i32_0 : i32, i32
  }
  func.func @transform_6(%arg0: i32) -> (i32, i32) {
    %c0_i32 = arith.constant 0 : i32
    %c0_i32_0 = arith.constant 0 : i32
    %c0_i32_1 = arith.constant 0 : i32
    return %c0_i32, %c0_i32_0 : i32, i32
  }
  func.func @transform_7(%arg0: i32) -> (i32, i32) {
    %c0_i32 = arith.constant 0 : i32
    %c0_i32_0 = arith.constant 0 : i32
    return %arg0, %c0_i32 : i32, i32
  }
}

</mosaic_0001>

<bundles_post_ra>
// kernel: tpu_custom_call.1
= control target key start
LH: loop header
LB: loop body
LE: loop exit
PB: predicated region body
PF: predicated region fallthrough
CT: control target
= control target key end

     0   :  { %v449_v1 = vmov 0.0   ;;  %vm450_vm0 = vmmov 0   ;;  %vm68_vm1 = vcmask 523264   ;;  %s560_s0 = inlined_call_operand.vmem [shape: bf16[8,64], index: 0, kind: input, shape index: {}]   ;;  %s561_s1 = inlined_call_operand.vmem [shape: bf16[64,128], index: 1, kind: input, shape index: {}]   ;;  %s562_s2 = inlined_call_operand.vmem [shape: f32[1,128], index: 2, kind: input, shape index: {}]   ;;  %s563_s3 = inlined_call_operand.vmem [shape: bf16[128,64], index: 3, kind: input, shape index: {}]   ;;  %s564_s4 = inlined_call_operand.vmem [shape: f32[1,64], index: 4, kind: input, shape index: {}]   ;;  %s565_s5 = inlined_call_operand.vmem [shape: bf16[64,128], index: 5, kind: input, shape index: {}]   ;;  %s566_s6 = inlined_call_operand.vmem [shape: f32[1,128], index: 6, kind: input, shape index: {}]   ;;  %s567_s7 = inlined_call_operand.hbm [shape: f32[8,128], index: 7, kind: output, shape index: {}]  }
   0x1   :  { %v411_v0 = vld [vmem:[%s561_s1 + $0x18] sm:$0xff]   ;;  %364 = vmatprep.subr.bf16.mxu0 %v449_v1  ;;  %376 = vmatprep.subr.bf16.mxu1 %v449_v1  ;;  %v412_v2 = vld [vmem:[%s561_s1 + $0x10] sm:$0xff]   ;;  %v413_v4 = vld [vmem:[%s561_s1 + $0x8] sm:$0xff]  }
   0x2   :  { %365 = vmatpush3.bf16.msra.mxu0 %v411_v0  ;;  %372 = vmatprep.mubr.msk.bf16.mxu0 %vm450_vm0, %v449_v1  ;;  %v415_v3 = vld [vmem:[%s563_s3 + $0x38] sm:$0xff]   ;;  %v416_v5 = vld [vmem:[%s563_s3 + $0x30] sm:$0xff]   ;;  %v414_v6 = vld [vmem:[%s561_s1] sm:$0xff]  }
   0x3   :  { %366 = vmatprep.subr.bf16.mxu0 %v449_v1  ;;  %392 = vmatprep.mubr.msk.bf16.mxu1 %vm450_vm0, %v449_v1  ;;  %v417_v7 = vld [vmem:[%s563_s3 + $0x28] sm:$0xff]   ;;  %v28_v8 = vld [vmem:[%s560_s0] sm:$0xf] }
   0x4   :  { %377 = vmatpush3.bf16.msra.mxu1 %v415_v3 }
   0x5   :  { %378 = vmatprep.subr.bf16.mxu1 %v449_v1 }
   0x6   :  { %367 = vmatpush3.bf16.msra.mxu0 %v412_v2 }
   0x7   :  { %368 = vmatprep.subr.bf16.mxu0 %v449_v1 }
   0x8   :  { %379 = vmatpush3.bf16.msra.mxu1 %v416_v5 }
   0x9   :  { %380 = vmatprep.subr.bf16.mxu1 %v449_v1 }
   0xa   :  { %369 = vmatpush3.bf16.msra.mxu0 %v413_v4 }
   0xb   :  { %370 = vmatprep.subr.bf16.mxu0 %v449_v1 }
   0xe   :  { %371 = vmatpush3.bf16.msra.mxu0 %v414_v6 }
   0xf   :  { %12 = vsyncpa [#allocation3], 0  ;;  %381 = vmatpush3.bf16.msra.mxu1 %v417_v7  ;;  %v418_v9 = vld [vmem:[%s563_s3 + $0x20] sm:$0xff]   ;;  %396 = vmatprep.subr.bf16.mxu0 %v449_v1  ;;  %v419_v10 = vld [vmem:[%s563_s3 + $0x18] sm:$0xff]   ;;  %s451_s14 = smov [#allocation2]  }
  0x10   :  { %382 = vmatprep.subr.bf16.mxu1 %v449_v1  ;;  %v420_v11 = vld [vmem:[%s563_s3 + $0x10] sm:$0xff]   ;;  %v421_v12 = vld [vmem:[%s563_s3 + $0x8] sm:$0xff]   ;;  %v422_v13 = vld [vmem:[%s563_s3] sm:$0xff]  }
  0x11   :  { %373 = vmatmul.mubr.msk.bf16.vlgmr.msra.gmra.mxu0 %vm68_vm1, %v28_v8  ;;  %v423_v14 = vld [vmem:[%s565_s5 + $0x18] sm:$0xff]   ;;  %v424_v15 = vld [vmem:[%s565_s5 + $0x10] sm:$0xff]   ;;  %v324_v16 = vld [vmem:[%s562_s2] ss:$0 sm:$0xff] }
  0x12   :  { %404 = vmatprep.mubr.msk.bf16.mxu0 %vm450_vm0, %v449_v1  ;;  %397 = vmatpush3.bf16.msra.mxu0 %v423_v14  ;;  %v425_v24 = vld [vmem:[%s565_s5 + $0x8] sm:$0xff]   ;;  %v426_v25 = vld [vmem:[%s565_s5] sm:$0xff]   ;;  %s316_s5 = sshll.u32 %s451_s14, 4  ;;  %s317_s5 = int_to_ptr.vmem [resolvable:$true] %s316_s5 }
  0x13   :  { %383 = vmatpush3.bf16.msra.mxu1 %v418_v9  ;;  %398 = vmatprep.subr.bf16.mxu0 %v449_v1  ;;  %v330_v26 = vld [vmem:[%s564_s4] ss:$0 sm:$0xff]  ;;  %s427_s4 = scalar_lea.vmem %s317_s5, 128  ;;  %p432_p1 = scmp.lt.s32.totalorder %s317_s5, %s317_s5 }
  0x14   :  { %384 = vmatprep.subr.bf16.mxu1 %v449_v1  ;;  %v339_v34 = vld [vmem:[%s566_s6] ss:$0 sm:$0xff]  ;;  %p428_p0 = scmp.ne.s32.totalorder %s317_s5, %s427_s4  ;;  %p433_p2 = scmp.lt.s32.totalorder %s427_s4, %s427_s4 }
  0x16   :  { %399 = vmatpush3.bf16.msra.mxu0 %v424_v15  ;;  %p434_p3 = por %p433_p2, %p432_p1 }
  0x17   :  { %385 = vmatpush3.bf16.msra.mxu1 %v419_v10  ;;  %400 = vmatprep.subr.bf16.mxu0 %v449_v1 }
  0x18   :  { %386 = vmatprep.subr.bf16.mxu1 %v449_v1  ;;  %p435_p4 = pnand %p434_p3, %p428_p0 }
  0x1a   :  { %401 = vmatpush3.bf16.msra.mxu0 %v425_v24 }
  0x1b   :  { %387 = vmatpush3.bf16.msra.mxu1 %v420_v11  ;;  %402 = vmatprep.subr.bf16.mxu0 %v449_v1 }
  0x1c   :  { %388 = vmatprep.subr.bf16.mxu1 %v449_v1 }
  0x1e   :  { %403 = vmatpush3.bf16.msra.mxu0 %v426_v25 }
  0x1f   :  { %389 = vmatpush3.bf16.msra.mxu1 %v421_v12 }
  0x20   :  { %390 = vmatprep.subr.bf16.mxu1 %v449_v1 }
  0x23   :  { %391 = vmatpush3.bf16.msra.mxu1 %v422_v13 }
  0xd1   :  { %v106_v17 = vpop.f32.mrf.mxu0 }
  0xd2   :  { %v107_v18 = vadd.f32 %v324_v16, %v106_v17 }
  0xd3   :  { %v374_v19 = vpop.f32.mrf.mxu0 }
  0xd4   :  { %v112_v20 = vmax.f32 %v107_v18, 0.0 }
  0xd5   :  { %v109_v21 = vpop.f32.mrf.mxu0 }
  0xd6   :  { %v113_v22 = vpack.c.bf16 %v112_v20, %v112_v20 }
  0xd7   :  { %v375_v23 = vpop.f32.mrf.mxu0 }
  0xd8   :  { %393 = vmatmul.mubr.bf16.vlgmr.msra.gmra.mxu1 %v113_v22 }
 0x198   :  { %v219_v27 = vpop.f32.mrf.mxu1 }
 0x199   :  { %v220_v28 = vadd.f32 %v330_v26, %v219_v27 }
 0x19a   :  { %v394_v29 = vpop.f32.mrf.mxu1 }
 0x19b   :  { %v225_v30 = vmax.f32 %v220_v28, 0.0 }
 0x19c   :  { %v222_v31 = vpop.f32.mrf.mxu1 }
 0x19d   :  { %v226_v32 = vpack.c.bf16 %v225_v30, %v225_v30 }
 0x19e   :  { %v395_v33 = vpop.f32.mrf.mxu1 }
 0x19f   :  { %405 = vmatmul.mubr.msk.bf16.vlgmr.msra.gmra.mxu0 %vm68_vm1, %v226_v32 }
 0x25f   :  { %v303_v35 = vpop.f32.mrf.mxu0 }
 0x260   :  { %v304_v36 = vadd.f32 %v339_v34, %v303_v35 }
 0x261   :  { %v406_v37 = vpop.f32.mrf.mxu0 }
 0x262   :  { %309 = vst [vmem:[#allocation2] sm:$0xff] %v304_v36 }
 0x263   :  { %v306_v38 = vpop.f32.mrf.mxu0 }
 0x264   :  { %438 = shalt.err (!%p435_p4)
}
 0x265   :  { %319 = dma.vmem_to_hbm [thread:$0]  %s317_s5, 128, %s567_s7, [#allocation3]   ;;  %v407_v39 = vpop.f32.mrf.mxu0 }
 0x266   :  { %447 = dma.done.wait [#allocation3], 128  }
 0x267   :  { %448 = vsyncadd [#allocation3], 4294967168 }
 0x268   :  { %323 = vsyncpa [#allocation3], 1 }

</bundles_post_ra>
